<compile_context>
chip_gen: v7x
topology: tpu7x:2x2x1
jax: 0.10.0
libtpu: 0.0.40
codegen_flags: <defaults>
</compile_context>

<pallas_src>
import math

import jax
import jax.numpy as jnp
import numpy as np
from jax import lax
from jax.experimental import pallas as pl
from jax.experimental.pallas import tpu as pltpu


LOG_OFFSET = 1e-12  # matches the module's log_lf branch exactly


# ----------------------------------------------------------------------------
# Deterministic parameter construction (torchaudio.functional equivalents)
# ----------------------------------------------------------------------------
def linear_fbanks(n_freqs: int, f_min: float, f_max: float, n_filter: int,
                  sample_rate: int) -> np.ndarray:
    """torchaudio.functional.linear_fbanks -> (n_freqs, n_filter) float32."""
    all_freqs = np.linspace(0.0, sample_rate // 2, n_freqs).astype(np.float32)
    f_pts = np.linspace(f_min, f_max, n_filter + 2).astype(np.float32)
    f_diff = f_pts[1:] - f_pts[:-1]                       # (n_filter + 1,)
    slopes = f_pts[None, :] - all_freqs[:, None]          # (n_freqs, n_filter + 2)
    down_slopes = (-1.0 * slopes[:, :-2]) / f_diff[:-1]   # (n_freqs, n_filter)
    up_slopes = slopes[:, 2:] / f_diff[1:]                # (n_freqs, n_filter)
    fb = np.maximum(0.0, np.minimum(down_slopes, up_slopes))
    return fb.astype(np.float32)


def create_dct(n_lfcc: int, n_lin: int, norm: str = "ortho") -> np.ndarray:
    """torchaudio.functional.create_dct -> (n_lin, n_lfcc) float32."""
    n = np.arange(float(n_lin))
    k = np.arange(float(n_lfcc))[:, None]
    dct = np.cos(math.pi / float(n_lin) * (n + 0.5) * k)  # (n_lfcc, n_lin)
    if norm is None:
        dct *= 2.0
    else:
        assert norm == "ortho"
        dct[0] *= 1.0 / math.sqrt(2.0)
        dct *= math.sqrt(2.0 / float(n_lin))
    return dct.T.astype(np.float32)                       # (n_lin, n_lfcc)


# ----------------------------------------------------------------------------
# Pallas kernel
#   x_ref:    (Bblk, F, T_tile)       spectrogram block (un-padded)
#   fbT_ref:  (n_lin, F)              pre-transposed filterbank (resident)
#   dctT_ref: (n_lfcc, n_lin)         pre-transposed DCT matrix (resident)
#   o_ref:    (Bblk, n_lfcc, T_tile)  output block, T lane-dense
# ----------------------------------------------------------------------------
def _lfcc_kernel(x_ref, fbT_ref, dctT_ref, o_ref):
    fbT = fbT_ref[...]                                     # (n_lin, F)
    dctT = dctT_ref[...]                                   # (n_lfcc, n_lin)
    nb = x_ref.shape[0]

    def body(b, carry):
        x = x_ref[b]                                       # (F, T_tile)
        # s = filter_mat.T @ x  -> (n_lin, T_tile)
        s = jnp.dot(fbT, x, preferred_element_type=jnp.float32)
        s = jnp.log(s + LOG_OFFSET)
        # y = dct_mat.T @ s     -> (n_lfcc, T_tile)
        y = jnp.dot(dctT, s, preferred_element_type=jnp.float32)
        o_ref[b] = y.astype(o_ref.dtype)
        return carry

    # fori_loop bounds live ranges of s/y across batch iterations (a static
    # Python unroll would keep all of them live and risk vreg spills).
    lax.fori_loop(0, nb, body, 0, unroll=(nb <= 4))


# ----------------------------------------------------------------------------
# Block-size heuristics
# ----------------------------------------------------------------------------
def _vmem_limit_bytes() -> int:
    """Generation-aware scoped-VMEM limit (v7x: 64 MiB/TC, v5e/v6e: 128 MiB)."""
    cap = None
    try:
        info = pltpu.get_tpu_info()
        cap = getattr(info, "vmem_capacity_bytes", None)
    except Exception:
        cap = None
    if not cap:
        cap = 64 * 1024 * 1024  # conservative default: v7x per-TensorCore VMEM
    return min(int(cap * 0.6), 100 * 1024 * 1024)


def _choose_block_sizes(B: int, T: int, F: int, n_lfcc: int,
                        vmem_limit: int, itemsize: int = 4):
    budget = int(vmem_limit * 0.7)                  # double-buffered x+out blocks
    col_bytes = (F + n_lfcc) * itemsize             # one T column of x + out
    max_cols = max(128, budget // (2 * col_bytes))  # cols per step within budget
    # Target ~8 MiB of x per grid step (amortizes ~0.35us step overhead, keeps
    # DMA saturated) but never more than the VMEM budget allows.
    target_cols = max(256, min(max_cols, (8 * 1024 * 1024) // (F * itemsize)))

    if T <= target_cols:
        t_tile = T                                  # full T: legal and pad-free
        bblk = max(1, min(B, target_cols // max(T, 1)))
    else:
        t_tile = max(256, (target_cols // 256) * 256)  # 256-multiple: full MXU N
        bblk = 1

    def n_steps(bb, tt):
        return -(-B // bb) * (-(-T // tt))

    # Keep >= 2 grid steps: feeds both v7x TensorCores and lets the
    # double-buffered pipeline actually overlap DMA with compute.
    if n_steps(bblk, t_tile) < 2:
        if B >= 2:
            bblk = -(-B // 2)
        elif T > 256:
            t_tile = max(128, ((T // 2) // 128) * 128)
    return bblk, t_tile


# ----------------------------------------------------------------------------
# Wrapper
# ----------------------------------------------------------------------------
def lfcc_forward(x: jax.Array, filter_mat: jax.Array, dct_mat: jax.Array,
                 *, block_sizes=None) -> jax.Array:
    """LFCC forward. x: (..., F, T) -> (B_flat, 1, n_lfcc, T), like the torch module."""
    shape = x.shape
    F, T = shape[-2], shape[-1]
    xb = x.reshape(-1, F, T).astype(jnp.float32)   # no padding, no extra HBM pass
    B = xb.shape[0]
    n_lin, n_lfcc = dct_mat.shape
    assert filter_mat.shape == (F, n_lin)

    vmem_limit = _vmem_limit_bytes()
    if block_sizes is None:
        bblk, t_tile = _choose_block_sizes(B, T, F, n_lfcc, vmem_limit)
    else:
        bblk, t_tile = block_sizes

    # Host-side layout plumbing on the tiny constants only.
    fbT = filter_mat.T.astype(jnp.float32)         # (n_lin, F)
    dctT = dct_mat.T.astype(jnp.float32)           # (n_lfcc, n_lin)

    grid = (pl.cdiv(B, bblk), pl.cdiv(T, t_tile))

    cost = pl.CostEstimate(
        flops=int(2 * B * T * (F * n_lin + n_lin * n_lfcc)),
        transcendentals=int(B * n_lin * T),
        bytes_accessed=int(4 * (B * F * T + n_lin * F + n_lfcc * n_lin
                                + B * n_lfcc * T)),
    )

    out = pl.pallas_call(
        _lfcc_kernel,
        out_shape=jax.ShapeDtypeStruct((B, n_lfcc, T), jnp.float32),
        grid_spec=pltpu.PrefetchScalarGridSpec(
            num_scalar_prefetch=0,
            grid=grid,
            in_specs=[
                # x: (bblk, F, t_tile). F spans the full dim (legal even though
                # 150 % 8 != 0); t_tile is a 128/256-multiple or the full T.
                pl.BlockSpec((bblk, F, t_tile), lambda i, j: (i, 0, j)),
                # Resident constants: constant index map -> fetched once.
                pl.BlockSpec((n_lin, F), lambda i, j: (0, 0)),
                pl.BlockSpec((n_lfcc, n_lin), lambda i, j: (0, 0)),
            ],
            out_specs=pl.BlockSpec((bblk, n_lfcc, t_tile), lambda i, j: (i, 0, j)),
        ),
        compiler_params=pltpu.CompilerParams(
            dimension_semantics=("parallel", "parallel"),
            vmem_limit_bytes=vmem_limit,
        ),
        cost_estimate=cost,
    )(xb, fbT, dctT)

    # torch's unsqueeze(1): pure reshape, no post-kernel copy.
    return jnp.expand_dims(out, 1)


def lfcc_reference(x, filter_mat, dct_mat):
    """Pure-JAX reference mirroring the PyTorch forward exactly."""
    shape = x.shape
    xb = x.reshape(-1, shape[-2], shape[-1]).astype(jnp.float32)
    s = jnp.matmul(jnp.swapaxes(xb, 1, 2), filter_mat)     # (B, T, n_lin)
    s = jnp.swapaxes(s, 1, 2)[:, None]                     # (B, 1, n_lin, T)
    s = jnp.log(s + LOG_OFFSET)
    y = jnp.matmul(jnp.swapaxes(s, -2, -1), dct_mat)       # (B, 1, T, n_lfcc)
    return jnp.swapaxes(y, -2, -1)                         # (B, 1, n_lfcc, T)


if __name__ == "__main__":
    # Module defaults: sample_rate=22050, n_lin=20, n_lfcc=20, f_min=0, f_max=11025,
    # norm='ortho', log_lf=True, num_of_scales=150 (= number of frequency rows F).
    sample_rate = 22050
    n_lin = 20
    n_lfcc = 20
    f_min = 0.0
    f_max = 11025.0
    num_of_scales = 150   # F
    T = 300               # time frames (not a multiple of 128)
    batch, chan = 2, 2    # leading dims are flattened by the module -> B=4

    # TODO(synk): log_lf=False branch (AmplitudeToDB with top_db clamping) is not
    # implemented; the module default log_lf=True is what this kernel computes.

    filter_mat = jnp.asarray(
        linear_fbanks(num_of_scales, f_min, f_max, n_lin, sample_rate))
    dct_mat = jnp.asarray(create_dct(n_lfcc, n_lin, "ortho"))

    key = jax.random.PRNGKey(0)
    # Positive power-spectrogram-like input.
    x = jax.random.uniform(key, (batch, chan, num_of_scales, T),
                           dtype=jnp.float32, minval=0.01, maxval=2.0)

    ref = lfcc_reference(x, filter_mat, dct_mat)

    # 1) Default block sizing (full-T blocks, >= 2 grid steps).
    out = jax.block_until_ready(lfcc_forward(x, filter_mat, dct_mat))
    assert out.shape == (batch * chan, 1, n_lfcc, T), out.shape
    assert jnp.allclose(out, ref, rtol=1e-4, atol=1e-4), "mismatch (default tiling)"

    # 2) Forced small tiles: exercises ragged final T tile (300 % 128 != 0),
    #    a ragged final batch block (4 % 3 != 0), and the in-kernel fori_loop.
    out2 = jax.block_until_ready(
        lfcc_forward(x, filter_mat, dct_mat, block_sizes=(3, 128)))
    assert out2.shape == (batch * chan, 1, n_lfcc, T), out2.shape
    assert jnp.allclose(out2, ref, rtol=1e-4, atol=1e-4), "mismatch (ragged tiling)"

    print("KERNEL_OK")
</pallas_src>

<mosaic_0001>
module attributes {stable_mosaic.version = 11 : i64} {
  func.func @_lfcc_kernel(%arg0: i32, %arg1: i32, %arg2: memref<2x150x300xf32, #tpu.memory_space<vmem>>, %arg3: memref<20x150xf32, #tpu.memory_space<vmem>>, %arg4: memref<20x20xf32, #tpu.memory_space<vmem>>, %arg5: memref<2x20x300xf32, #tpu.memory_space<vmem>>) attributes {dimension_semantics = [#tpu.dimension_semantics<parallel>, #tpu.dimension_semantics<parallel>], iteration_bounds = array<i64: 2, 1>, scalar_prefetch = 0 : i64, scratch_operands = 0 : i64, tpu.core_type = #tpu.core_type<tc>, window_params = [{transform_indices = @transform_0, window_bounds = array<i64: 2, 150, 300>}, {pipeline_mode = #tpu.pipeline_mode<synchronous>, transform_indices = @transform_1, window_bounds = array<i64: 20, 150>}, {pipeline_mode = #tpu.pipeline_mode<synchronous>, transform_indices = @transform_2, window_bounds = array<i64: 20, 20>}, {transform_indices = @transform_3, window_bounds = array<i64: 2, 20, 300>}]} {
    %c0 = arith.constant 0 : index
    %c0_0 = arith.constant 0 : index
    %0 = vector.load %arg3[%c0, %c0_0] : memref<20x150xf32, #tpu.memory_space<vmem>>, vector<20x150xf32>
    %c0_1 = arith.constant 0 : index
    %c0_2 = arith.constant 0 : index
    %1 = vector.load %arg4[%c0_1, %c0_2] : memref<20x20xf32, #tpu.memory_space<vmem>>, vector<20x20xf32>
    %c0_i32 = arith.constant 0 : i32
    %2 = arith.index_cast %c0_i32 : i32 to index
    %c0_3 = arith.constant 0 : index
    %c0_4 = arith.constant 0 : index
    %3 = vector.load %arg2[%2, %c0_3, %c0_4] : memref<2x150x300xf32, #tpu.memory_space<vmem>>, vector<1x150x300xf32>
    %4 = vector.shape_cast %3 : vector<1x150x300xf32> to vector<150x300xf32>
    %cst = arith.constant dense<0.000000e+00> : vector<20x300xf32>
    %5 = tpu.matmul %0, %4, %cst {dimension_numbers = #tpu.dot_dimension_numbers<[1], [0], [0], [1], [0, 0, 1, 1], [], []>} : vector<20x150xf32>, vector<150x300xf32>, vector<20x300xf32> -> vector<20x300xf32>
    %cst_5 = arith.constant 9.99999996E-13 : f32
    %6 = vector.broadcast %cst_5 : f32 to vector<20x300xf32>
    %7 = arith.addf %5, %6 : vector<20x300xf32>
    %8 = math.log %7 : vector<20x300xf32>
    %cst_6 = arith.constant dense<0.000000e+00> : vector<20x300xf32>
    %9 = tpu.matmul %1, %8, %cst_6 {dimension_numbers = #tpu.dot_dimension_numbers<[1], [0], [0], [1], [0, 0, 1, 1], [], []>} : vector<20x20xf32>, vector<20x300xf32>, vector<20x300xf32> -> vector<20x300xf32>
    %10 = arith.index_cast %c0_i32 : i32 to index
    %c0_7 = arith.constant 0 : index
    %c0_8 = arith.constant 0 : index
    %11 = vector.load %arg5[%10, %c0_7, %c0_8] : memref<2x20x300xf32, #tpu.memory_space<vmem>>, vector<1x20x300xf32>
    %12 = vector.shape_cast %11 : vector<1x20x300xf32> to vector<20x300xf32>
    %13 = vector.shape_cast %9 : vector<20x300xf32> to vector<1x20x300xf32>
    tpu.vector_store %arg5[%10, %c0_7, %c0_8], %13 {strides = array<i32>} : memref<2x20x300xf32, #tpu.memory_space<vmem>>, vector<1x20x300xf32>,
    %c1_i32 = arith.constant 1 : i32
    %14 = arith.index_cast %c1_i32 : i32 to index
    %c0_9 = arith.constant 0 : index
    %c0_10 = arith.constant 0 : index
    %15 = vector.load %arg2[%14, %c0_9, %c0_10] : memref<2x150x300xf32, #tpu.memory_space<vmem>>, vector<1x150x300xf32>
    %16 = vector.shape_cast %15 : vector<1x150x300xf32> to vector<150x300xf32>
    %cst_11 = arith.constant dense<0.000000e+00> : vector<20x300xf32>
    %17 = tpu.matmul %0, %16, %cst_11 {dimension_numbers = #tpu.dot_dimension_numbers<[1], [0], [0], [1], [0, 0, 1, 1], [], []>} : vector<20x150xf32>, vector<150x300xf32>, vector<20x300xf32> -> vector<20x300xf32>
    %cst_12 = arith.constant 9.99999996E-13 : f32
    %18 = vector.broadcast %cst_12 : f32 to vector<20x300xf32>
    %19 = arith.addf %17, %18 : vector<20x300xf32>
    %20 = math.log %19 : vector<20x300xf32>
    %cst_13 = arith.constant dense<0.000000e+00> : vector<20x300xf32>
    %21 = tpu.matmul %1, %20, %cst_13 {dimension_numbers = #tpu.dot_dimension_numbers<[1], [0], [0], [1], [0, 0, 1, 1], [], []>} : vector<20x20xf32>, vector<20x300xf32>, vector<20x300xf32> -> vector<20x300xf32>
    %22 = arith.index_cast %c1_i32 : i32 to index
    %c0_14 = arith.constant 0 : index
    %c0_15 = arith.constant 0 : index
    %23 = vector.load %arg5[%22, %c0_14, %c0_15] : memref<2x20x300xf32, #tpu.memory_space<vmem>>, vector<1x20x300xf32>
    %24 = vector.shape_cast %23 : vector<1x20x300xf32> to vector<20x300xf32>
    %25 = vector.shape_cast %21 : vector<20x300xf32> to vector<1x20x300xf32>
    tpu.vector_store %arg5[%22, %c0_14, %c0_15], %25 {strides = array<i32>} : memref<2x20x300xf32, #tpu.memory_space<vmem>>, vector<1x20x300xf32>,
    %c2_i32 = arith.constant 2 : i32
    return
  }
  func.func @transform_0(%arg0: i32, %arg1: i32) -> (i32, i32, i32) {
    %c0_i32 = arith.constant 0 : i32
    %c0_i32_0 = arith.constant 0 : i32
    return %arg0, %c0_i32, %arg1 : i32, i32, i32
  }
  func.func @transform_1(%arg0: i32, %arg1: i32) -> (i32, i32) {
    %c0_i32 = arith.constant 0 : i32
    %c0_i32_0 = arith.constant 0 : i32
    %c0_i32_1 = arith.constant 0 : i32
    return %c0_i32, %c0_i32_0 : i32, i32
  }
  func.func @transform_2(%arg0: i32, %arg1: i32) -> (i32, i32) {
    %c0_i32 = arith.constant 0 : i32
    %c0_i32_0 = arith.constant 0 : i32
    %c0_i32_1 = arith.constant 0 : i32
    return %c0_i32, %c0_i32_0 : i32, i32
  }
  func.func @transform_3(%arg0: i32, %arg1: i32) -> (i32, i32, i32) {
    %c0_i32 = arith.constant 0 : i32
    %c0_i32_0 = arith.constant 0 : i32
    return %arg0, %c0_i32, %arg1 : i32, i32, i32
  }
}

</mosaic_0001>

<bundles_post_ra>
// kernel: tpu_custom_call.1
= control target key start
LH: loop header
LB: loop body
LE: loop exit
PB: predicated region body
PF: predicated region fallthrough
CT: control target
= control target key end

     0   :  { %s1606_s12 = smov 0   ;;  %s1608_s13 = smov 0   ;;  %s1944_s0 = inlined_call_operand.vmem [shape: f32[4,150,300], index: 0, kind: input, shape index: {}]   ;;  %s1945_s1 = inlined_call_operand.vmem [shape: f32[20,150], index: 1, kind: input, shape index: {}]   ;;  %s1946_s2 = inlined_call_operand.vmem [shape: f32[20,20], index: 2, kind: input, shape index: {}]   ;;  %s1947_s3 = inlined_call_operand.vmem [shape: f32[4,20,300], index: 3, kind: output, shape index: {}]  }
   0x1   :  { %s1610_s14 = smov 0  }
   0x2 LB: > { %s25_s15 = sadd.s32 1, %s1577_s13  ;;  %p1203_p0 = scmp.ge.s32.totalorder %s1581_s14, 1  ;;  %s1581_s14 = sphi %s1610_s14, %s13_s14   ;;  %s1577_s13 = sphi %s1608_s13, %s1949_s13   ;;  %s1573_s12 = sphi %s1606_s12, %s1948_s12  }
   0x3   : > { %p27_p1 = scmp.ge.s32.totalorder %s25_s15, 2  ;;  %p160_p2 = scmp.lt.s32.totalorder %s1581_s14, 3 }
   0x5   : > { %s1951_s15 = smov (%p27_p1, %s25_s15), 0  ;;  %p161_p3 = pnand %p1203_p0, %p160_p2 }
   0x6   : > { %s1204_s16 = sshll.u32 (!%p161_p3), %s1573_s12, 1  ;;  %v1627_v0 = vld [vmem:[%s1945_s1 + $0x8] sm:$0xff] (!%p161_p3)  ;;  %vm284_vm0 = vcmask (!%p161_p3), 179200   ;;  %v1583_v1 = vmov (!%p161_p3), 0.0|0.0   ;;  %vm294_vm1 = vcmask (!%p161_p3), 1045504   ;;  %vm1585_vm2 = vmmov (!%p161_p3), 0  }
   0x7   : > { %164 = sbr.rel (%p161_p3) target bundleno = 801 (0x321), region = 32  ;;  %p196_p4 = scmp.lt.s32.totalorder (!%p161_p3), %s1204_s16, 3  ;;  %1390 = vmatprep.subr.bf16.mxu1 (!%p161_p3), %v1583_v1  ;;  %1210 = vmatprep.mubr.msk.f32.mxu0 (!%p161_p3), %vm284_vm0, %v1627_v0  ;;  %vm495_vm3 = vcmask (!%p161_p3), 1043456   ;;  %vm485_vm4 = vcmask (!%p161_p3), 162816   ;;  %vm670_vm5 = vcmask (!%p161_p3), 359424   ;;  %vm677_vm6 = vcmask (!%p161_p3), 355328  }
   0x8   : > { %1214 = vmatprep.mubr.msk.f32.mxu1 (!%p161_p3), %vm284_vm0, %v1627_v0 }
   0xe   : > { %s1953_s16 = smov (!%p196_p4, %s1204_s16), 3 }
   0xf   : > { %s1494_s19 = smul.u32 456, %s1953_s16 }
  0x10   : > { %s1495_s12 = smul.u32 72, %s1953_s16 }
  0x11   : > { %s1640_s22 = scalar_lea.vmem %s1944_s0, %s1494_s19 }
  0x12   : > { %v228_v2 = vld [vmem:[%s1640_s22 + $0x8] sm:$0xff]  ;;  %v231_v3 = vld [vmem:[%s1640_s22 + $0x20] sm:$0xff]  ;;  %v230_v6 = vld [vmem:[%s1640_s22 + $0x18] sm:$0xff]  ;;  %s1887_s19 = scalar_lea.vmem %s1947_s3, %s1495_s12 }
  0x13   : > { %v227_v4 = vld [vmem:[%s1640_s22] sm:$0xff]  ;;  %v1354_v5 = vpack.c.bf16 %v231_v3, %v228_v2  ;;  %v229_v7 = vld [vmem:[%s1640_s22 + $0x10] sm:$0xff]  ;;  %v232_v8 = vld [vmem:[%s1640_s22 + $0x28] sm:$0xff] }
  0x14   : > { %v1356_v9 = vpack.c.bf16 %v230_v6, %v227_v4  ;;  %v1391_v10 = vpack.c.bf16 %v232_v8, %v229_v7  ;;  %v234_v11 = vld [vmem:[%s1640_s22 + $0x38] sm:$0xff]  ;;  %v237_v12 = vld [vmem:[%s1640_s22 + $0x50] sm:$0xff]  ;;  %v236_v15 = vld [vmem:[%s1640_s22 + $0x48] sm:$0xff] }
  0x15   : > { %v233_v13 = vld [vmem:[%s1640_s22 + $0x30] sm:$0xff]  ;;  %1355 = vmatprep.subr.bf16.mxu0 %v1354_v5  ;;  %v1358_v14 = vpack.c.bf16 %v237_v12, %v234_v11  ;;  %v235_v16 = vld [vmem:[%s1640_s22 + $0x40] sm:$0xff]  ;;  %v238_v17 = vld [vmem:[%s1640_s22 + $0x58] sm:$0xff] }
  0x16   : > { %1357 = vmatpush1.bf16.msra.mxu0 %v1356_v9  ;;  %1392 = vmatpush1.bf16.msra.mxu1 %v1391_v10  ;;  %v1360_v18 = vpack.c.bf16 %v236_v15, %v233_v13  ;;  %v1394_v19 = vpack.c.bf16 %v238_v17, %v235_v16  ;;  %v240_v20 = vld [vmem:[%s1640_s22 + $0x68] sm:$0xff]  ;;  %v243_v21 = vld [vmem:[%s1640_s22 + $0x80] sm:$0xff]  ;;  %v242_v24 = vld [vmem:[%s1640_s22 + $0x78] sm:$0xff] }
  0x17   : > { %v239_v22 = vld [vmem:[%s1640_s22 + $0x60] sm:$0xff]  ;;  %1359 = vmatprep.subr.bf16.mxu0 %v1358_v14  ;;  %1393 = vmatprep.subr.bf16.mxu1 %v1583_v1  ;;  %v1362_v23 = vpack.c.bf16 %v243_v21, %v240_v20  ;;  %v241_v25 = vld [vmem:[%s1640_s22 + $0x70] sm:$0xff]  ;;  %v244_v26 = vld [vmem:[%s1640_s22 + $0x88] sm:$0xff] }
  0x18   : > { %v246_v27 = vld [vmem:[%s1640_s22 + $0x98] sm:$0xff]  ;;  %v249_v28 = vld [vmem:[%s1640_s22 + $0xb0] sm:$0xff]  ;;  %v1364_v29 = vpack.c.bf16 %v242_v24, %v239_v22  ;;  %v1397_v30 = vpack.c.bf16 %v244_v26, %v241_v25  ;;  %v248_v33 = vld [vmem:[%s1640_s22 + $0xa8] sm:$0xff] }
  0x19   : > { %v245_v31 = vld [vmem:[%s1640_s22 + $0x90] sm:$0xff]  ;;  %v1366_v32 = vpack.c.bf16 %v249_v28, %v246_v27  ;;  %v247_v34 = vld [vmem:[%s1640_s22 + $0xa0] sm:$0xff]  ;;  %v250_v35 = vld [vmem:[%s1640_s22 + $0xb8] sm:$0xff] }
  0x1a   : > { %1361 = vmatpush1.bf16.msra.mxu0 %v1360_v18  ;;  %1395 = vmatpush1.bf16.msra.mxu1 %v1394_v19  ;;  %v252_v36 = vld [vmem:[%s1640_s22 + $0xc8] sm:$0xff]  ;;  %v255_v37 = vld [vmem:[%s1640_s22 + $0xe0] sm:$0xff]  ;;  %v1368_v38 = vpack.c.bf16 %v248_v33, %v245_v31  ;;  %v1400_v39 = vpack.c.bf16 %v250_v35, %v247_v34  ;;  %v254_v42 = vld [vmem:[%s1640_s22 + $0xd8] sm:$0xff] }
  0x1b   : > { %1363 = vmatprep.subr.bf16.mxu0 %v1362_v23  ;;  %1396 = vmatprep.subr.bf16.mxu1 %v1583_v1  ;;  %v251_v40 = vld [vmem:[%s1640_s22 + $0xc0] sm:$0xff]  ;;  %v1370_v41 = vpack.c.bf16 %v255_v37, %v252_v36  ;;  %v253_v43 = vld [vmem:[%s1640_s22 + $0xd0] sm:$0xff]  ;;  %v256_v44 = vld [vmem:[%s1640_s22 + $0xe8] sm:$0xff]  ;;  %v1584_v23 = vmov 0.0  }
  0x1c   : > { %v258_v45 = vld [vmem:[%s1640_s22 + $0xf8] sm:$0xff]  ;;  %v261_v46 = vld [vmem:[%s1640_s22 + $0x110] sm:$0xff]  ;;  %v1372_v47 = vpack.c.bf16 %v254_v42, %v251_v40  ;;  %v1403_v48 = vpack.c.bf16 %v256_v44, %v253_v43  ;;  %v260_v51 = vld [vmem:[%s1640_s22 + $0x108] sm:$0xff] }
  0x1d   : > { %v257_v49 = vld [vmem:[%s1640_s22 + $0xf0] sm:$0xff]  ;;  %v1374_v50 = vpack.c.bf16 %v261_v46, %v258_v45  ;;  %v259_v52 = vld [vmem:[%s1640_s22 + $0x100] sm:$0xff]  ;;  %v262_v53 = vld [vmem:[%s1640_s22 + $0x118] sm:$0xff] }
  0x1e   : > { %1365 = vmatpush1.bf16.msra.mxu0 %v1364_v29  ;;  %1398 = vmatpush1.bf16.msra.mxu1 %v1397_v30  ;;  %v264_v54 = vld [vmem:[%s1640_s22 + $0x128] sm:$0xff]  ;;  %v267_v55 = vld [vmem:[%s1640_s22 + $0x140] sm:$0xff]  ;;  %v1376_v56 = vpack.c.bf16 %v260_v51, %v257_v49  ;;  %v1406_v57 = vpack.c.bf16 %v262_v53, %v259_v52  ;;  %v266_v60 = vld [vmem:[%s1640_s22 + $0x138] sm:$0xff] }
  0x1f   : > { %1367 = vmatprep.subr.bf16.mxu0 %v1366_v32  ;;  %1399 = vmatprep.subr.bf16.mxu1 %v1583_v1  ;;  %v263_v58 = vld [vmem:[%s1640_s22 + $0x120] sm:$0xff]  ;;  %v1378_v59 = vpack.c.bf16 %v267_v55, %v264_v54  ;;  %v265_v61 = vld [vmem:[%s1640_s22 + $0x130] sm:$0xff]  ;;  %v268_v62 = vld [vmem:[%s1640_s22 + $0x148] sm:$0xff] }
  0x20   : > { %v270_v63 = vld [vmem:[%s1640_s22 + $0x158] sm:$0xff]  ;;  %v273_v2 = vld [vmem:[%s1640_s22 + $0x170] sm:$0xff]  ;;  %v1380_v3 = vpack.c.bf16 %v266_v60, %v263_v58  ;;  %v1409_v4 = vpack.c.bf16 %v268_v62, %v265_v61  ;;  %v272_v7 = vld [vmem:[%s1640_s22 + $0x168] sm:$0xff] }
  0x21   : > { %v269_v5 = vld [vmem:[%s1640_s22 + $0x150] sm:$0xff]  ;;  %v1382_v6 = vpack.c.bf16 %v273_v2, %v270_v63  ;;  %v271_v8 = vld [vmem:[%s1640_s22 + $0x160] sm:$0xff]  ;;  %v274_v9 = vld [vmem:[%s1640_s22 + $0x178] sm:$0xff] }
  0x22   : > { %1369 = vmatpush1.bf16.msra.mxu0 %v1368_v38  ;;  %1401 = vmatpush1.bf16.msra.mxu1 %v1400_v39  ;;  %v276_v10 = vld [vmem:[%s1640_s22 + $0x188] sm:$0xff]  ;;  %v279_v11 = vld [vmem:[%s1640_s22 + $0x1a0] sm:$0xff]  ;;  %v1384_v12 = vpack.c.bf16 %v272_v7, %v269_v5  ;;  %v1412_v13 = vpack.c.bf16 %v274_v9, %v271_v8  ;;  %v278_v16 = vld [vmem:[%s1640_s22 + $0x198] sm:$0xff] }
  0x23   : > { %1371 = vmatprep.subr.bf16.mxu0 %v1370_v41  ;;  %1402 = vmatprep.subr.bf16.mxu1 %v1583_v1  ;;  %v275_v14 = vld [vmem:[%s1640_s22 + $0x180] sm:$0xff]  ;;  %v1386_v15 = vpack.c.bf16 %v279_v11, %v276_v10  ;;  %v277_v17 = vld [vmem:[%s1640_s22 + $0x190] sm:$0xff]  ;;  %v280_v18 = vld [vmem:[%s1640_s22 + $0x1a8] sm:$0xff] }
  0x24   : > { %v1388_v19 = vpack.c.bf16 %v278_v16, %v275_v14  ;;  %v1415_v20 = vpack.c.bf16 %v280_v18, %v277_v17  ;;  %v282_v21 = vld [vmem:[%s1640_s22 + $0x1b8] sm:$0x3f]  ;;  %v281_v22 = vld [vmem:[%s1640_s22 + $0x1b0] sm:$0x3f]  ;;  %v283_v24 = vld [vmem:[%s1640_s22 + $0x1c0] sm:$0x3f] }
  0x25   : > { %v1712_v25 = vld [vmem:[%s1945_s1] sm:$0xff]  ;;  %v1717_v26 = vld [vmem:[%s1945_s1 + $0x18] sm:$0xff]  ;;  %v1728_v27 = vld [vmem:[%s1945_s1 + $0x10] sm:$0xff] }
  0x26   : > { %1373 = vmatpush1.bf16.msra.mxu0 %v1372_v47  ;;  %1404 = vmatpush1.bf16.msra.mxu1 %v1403_v48  ;;  %v1735_v28 = vld [vmem:[%s1945_s1 + $0x28] sm:$0xf]  ;;  %v1745_v29 = vld [vmem:[%s1945_s1 + $0x20] sm:$0xf]  ;;  %v1227_v8 = vld [vmem:[%s1640_s22 + $0x1d0] sm:$0xff] }
  0x27   : > { %1375 = vmatprep.subr.bf16.mxu0 %v1374_v50  ;;  %1405 = vmatprep.subr.bf16.mxu1 %v1583_v1  ;;  %v1230_v9 = vld [vmem:[%s1640_s22 + $0x1e8] sm:$0xff]  ;;  %v1228_v10 = vld [vmem:[%s1640_s22 + $0x1d8] sm:$0xff]  ;;  %v1229_v14 = vld [vmem:[%s1640_s22 + $0x1e0] sm:$0xff] }
  0x28   : > { %v1236_v16 = vld [vmem:[%s1640_s22 + $0x218] sm:$0xff]  ;;  %v1767_v18 = vld [vmem:[%s1946_s2] sm:$0xff] }
  0x2a   : > { %1377 = vmatpush1.bf16.msra.mxu0 %v1376_v56  ;;  %1407 = vmatpush1.bf16.msra.mxu1 %v1406_v57 }
  0x2b   : > { %1379 = vmatprep.subr.bf16.mxu0 %v1378_v59  ;;  %1408 = vmatprep.subr.bf16.mxu1 %v1583_v1 }
  0x2e   : > { %1381 = vmatpush1.bf16.msra.mxu0 %v1380_v3  ;;  %1410 = vmatpush1.bf16.msra.mxu1 %v1409_v4 }
  0x2f   : > { %1383 = vmatprep.subr.bf16.mxu0 %v1382_v6  ;;  %1411 = vmatprep.subr.bf16.mxu1 %v1583_v1 }
  0x32   : > { %1385 = vmatpush1.bf16.msra.mxu0 %v1384_v12  ;;  %1413 = vmatpush1.bf16.msra.mxu1 %v1412_v13  ;;  %v1231_v12 = vld [vmem:[%s1640_s22 + $0x1f0] sm:$0xff]  ;;  %v1226_v13 = vld [vmem:[%s1640_s22 + $0x1c8] sm:$0xff] }
  0x33   : > { %1387 = vmatprep.subr.bf16.mxu0 %v1386_v15  ;;  %1414 = vmatprep.subr.bf16.mxu1 %v1583_v1  ;;  %v1233_v15 = vld [vmem:[%s1640_s22 + $0x200] sm:$0xff] }
  0x36   : > { %1389 = vmatpush1.bf16.msra.mxu0 %v1388_v19  ;;  %1416 = vmatpush1.bf16.msra.mxu1 %v1415_v20  ;;  %v1424_v19 = vpack.c.bf16 %v1230_v9, %v1227_v8  ;;  %v1461_v20 = vpack.c.bf16 %v1231_v12, %v1228_v10  ;;  %v1259_v8 = vld [vmem:[%s1640_s22 + $0x2d0] sm:$0xff]  ;;  %v1264_v12 = vld [vmem:[%s1640_s22 + $0x2f8] sm:$0xff] }
  0x37   : > { %1208 = vmatprep.subr.msk.mxu0 %vm294_vm1, %v282_v21  ;;  %423 = vmatprep.subr.mxu1 %v1584_v23  ;;  %v1426_v21 = vpack.c.bf16 %v1229_v14, %v1226_v13  ;;  %v1263_v9 = vld [vmem:[%s1640_s22 + $0x2f0] sm:$0xff] }
  0x38   : > { %v1267_v14 = vld [vmem:[%s1640_s22 + $0x310] sm:$0xff] }
  0x3a   : > { %1209 = vmatpush1.msk.msra.mxu0 %vm294_vm1, %v281_v22  ;;  %1213 = vmatpush1.msk.msra.mxu1 %vm294_vm1, %v283_v24  ;;  %v1234_v22 = vld [vmem:[%s1640_s22 + $0x208] sm:$0xff]  ;;  %v1428_v24 = vpack.c.bf16 %v1236_v16, %v1233_v15  ;;  %v1265_v16 = vld [vmem:[%s1640_s22 + $0x300] sm:$0xff] }
  0x3b   : > { %369 = vmatmul.mubr.f32.vlgmr.msra.gmra.mrb[0].mxu0 %v1712_v25  ;;  %452 = vmatmul.mubr.f32.vlgmr.msra.gmra.mrb[0].mxu1 %v1712_v25  ;;  %v1262_v15 = vld [vmem:[%s1640_s22 + $0x2e8] sm:$0xff] }
  0x3c   : > { %1211 = vmatprep.mubr.msk.f32.mxu0 %vm284_vm0, %v1717_v26  ;;  %1215 = vmatprep.mubr.msk.f32.mxu1 %vm284_vm0, %v1717_v26 }
  0x3d   : > { %1421 = vmatprep.subr.bf16.mxu1 %v1583_v1 }
  0x3f   : > { %375 = vmatmul.mubr.f32.gmra.mrb[2].mxu0 %v1728_v27  ;;  %457 = vmatmul.mubr.f32.gmra.mrb[2].mxu1 %v1728_v27 }
  0x40   : > { %1212 = vmatprep.mubr.msk.f32.mxu0 %vm284_vm0, %v1735_v28  ;;  %1216 = vmatprep.mubr.msk.f32.mxu1 %vm284_vm0, %v1735_v28 }
  0x43   : > { %381 = vmatmul.mubr.f32.gmra.mrb[4].mxu0 %v1745_v29  ;;  %462 = vmatmul.mubr.f32.gmra.mrb[4].mxu1 %v1745_v29 }
  0x44   : > { %569 = vmatprep.mubr.f32.mxu0 %v1584_v23  ;;  %1330 = vmatprep.mubr.msk.f32.mxu1 %vm1585_vm2, %v1584_v23 }
 0x10e   : > { %v370_v30 = vpop.f32.mrb[0].mxu0  ;;  %v453_v31 = vpop.f32.mrb[0].mxu1 }
 0x10f   : > { %v371_v32 = vadd.f32 1e-12, %v370_v30  ;;  %v372_v33 = vpop.f32.mrb[1].mxu0  ;;  %v454_v34 = vadd.f32 1e-12, %v453_v31  ;;  %v455_v35 = vpop.f32.mrb[1].mxu1 }
 0x110   : > { %v373_v36 = vadd.f32 1e-12, %v372_v33  ;;  %v1237_v30 = vld [vmem:[%s1640_s22 + $0x220] sm:$0xff]  ;;  %v1232_v31 = vld [vmem:[%s1640_s22 + $0x1f8] sm:$0xff]  ;;  %v1239_v33 = vld [vmem:[%s1640_s22 + $0x230] sm:$0xff] }
 0x111   : > { %1523 = vlog2.f32 %v371_v32  ;;  %v1235_v32 = vld [vmem:[%s1640_s22 + $0x210] sm:$0xff]  ;;  %v1464_v35 = vpack.c.bf16 %v1237_v30, %v1234_v22  ;;  %v1270_v22 = vld [vmem:[%s1640_s22 + $0x328] sm:$0xff]  ;;  %v1273_v30 = vld [vmem:[%s1640_s22 + $0x340] sm:$0xff] }
 0x112   : > { %v376_v37 = vpop.f32.mrb[2].mxu0  ;;  %v458_v38 = vpop.f32.mrb[2].mxu1  ;;  %1525 = vlog2.f32 %v454_v34  ;;  %v1242_v34 = vld [vmem:[%s1640_s22 + $0x248] sm:$0xff] }
 0x113   : > { %v377_v39 = vadd.f32 1e-12, %v376_v37  ;;  %v378_v40 = vpop.f32.mrb[3].mxu0  ;;  %v459_v41 = vadd.f32 1e-12, %v458_v38  ;;  %v460_v42 = vpop.f32.mrb[3].mxu1  ;;  %1527 = vlog2.f32 %v373_v36  ;;  %v1430_v36 = vpack.c.bf16 %v1235_v32, %v1232_v31 }
 0x114   : > { %v379_v43 = vadd.f32 1e-12, %v378_v40  ;;  %v1240_v37 = vld [vmem:[%s1640_s22 + $0x238] sm:$0xff]  ;;  %v1786_v38 = vld [vmem:[%s1946_s2 + $0x8] sm:$0xff]  ;;  %v1243_v40 = vld [vmem:[%s1640_s22 + $0x250] sm:$0xff] }
 0x115   : > { %1529 = vlog2.f32 %v377_v39  ;;  %v1432_v39 = vpack.c.bf16 %v1242_v34, %v1239_v33  ;;  %v1241_v42 = vld [vmem:[%s1640_s22 + $0x240] sm:$0xff]  ;;  %v1268_v31 = vld [vmem:[%s1640_s22 + $0x318] sm:$0xff]  ;;  %v1271_v32 = vld [vmem:[%s1640_s22 + $0x330] sm:$0xff] }
 0x116   : > { %1531 = vlog2.f32 %v379_v43  ;;  %v382_v44 = vpop.f32.mrb[4].mxu0  ;;  %v463_v45 = vpop.f32.mrb[4].mxu1  ;;  %v1245_v43 = vld [vmem:[%s1640_s22 + $0x260] sm:$0xff]  ;;  %v1275_v33 = vld [vmem:[%s1640_s22 + $0x350] sm:$0xff]  ;;  %v1278_v34 = vld [vmem:[%s1640_s22 + $0x368] sm:$0xff] }
 0x117   : > { %1533 = vlog2.f32 %v459_v41  ;;  %v383_v46 = vadd.f32 1e-12, %v382_v44  ;;  %v384_v47 = vpop.f32.mrb[5].mxu0  ;;  %v464_v48 = vadd.f32 1e-12, %v463_v45  ;;  %v465_v49 = vpop.f32.mrb[5].mxu1  ;;  %v1467_v45 = vpack.c.bf16 %v1243_v40, %v1240_v37 }
 0x118   : > { %v385_v50 = vadd.f32 1e-12, %v384_v47  ;;  %v1238_v41 = vld [vmem:[%s1640_s22 + $0x228] sm:$0xff]  ;;  %v1248_v44 = vld [vmem:[%s1640_s22 + $0x278] sm:$0xff]  ;;  %v1279_v40 = vld [vmem:[%s1640_s22 + $0x370] sm:$0xff] }
 0x119   : > { %1535 = vlog2.f32 %v383_v46  ;;  %v1434_v46 = vpack.c.bf16 %v1241_v42, %v1238_v41  ;;  %v1246_v47 = vld [vmem:[%s1640_s22 + $0x268] sm:$0xff]  ;;  %v1436_v49 = vpack.c.bf16 %v1248_v44, %v1245_v43  ;;  %v1276_v37 = vld [vmem:[%s1640_s22 + $0x358] sm:$0xff]  ;;  %v1277_v42 = vld [vmem:[%s1640_s22 + $0x360] sm:$0xff] }
 0x11a   : > { %1537 = vlog2.f32 %v385_v50  ;;  %v1249_v50 = vld [vmem:[%s1640_s22 + $0x280] sm:$0xff]  ;;  %v1274_v41 = vld [vmem:[%s1640_s22 + $0x348] sm:$0xff]  ;;  %v1485_v43 = vpack.c.bf16 %v1279_v40, %v1276_v37 }
 0x11b   : > { %1539 = vlog2.f32 %v464_v48  ;;  %v1524_v51 = vpop.eup %1523  ;;  %v1805_v48 = vld [vmem:[%s1946_s2 + $0x10] sm:$0xf]  ;;  %v1458_v44 = vpack.c.bf16 %v1277_v42, %v1274_v41 }
 0x11c   : > { %v1526_v52 = vpop.eup %1525  ;;  %v468_v56 = vmul.f32 0.6931472, %v1524_v51  ;;  %v1244_v51 = vld [vmem:[%s1640_s22 + $0x258] sm:$0xff] }
 0x11d   : > { %v1528_v53 = vpop.eup %1527  ;;  %v472_v57 = vmul.f32 0.6931472, %v1526_v52  ;;  %v1247_v52 = vld [vmem:[%s1640_s22 + $0x270] sm:$0xff] }
 0x11e   : > { %v470_v60 = vmul.f32 0.6931472, %v1528_v53  ;;  %v1251_v53 = vld [vmem:[%s1640_s22 + $0x290] sm:$0xff] }
 0x11f   : > { %v1530_v54 = vpop.eup %1529 }
 0x120   : > { %v1532_v55 = vpop.eup %1531  ;;  %v474_v58 = vmul.f32 0.6931472, %v1530_v54  ;;  %v1254_v54 = vld [vmem:[%s1640_s22 + $0x2a8] sm:$0xff] }
 0x121   : > { %v1534_v59 = vpop.eup %1533  ;;  %v476_v61 = vmul.f32 0.6931472, %v1532_v55  ;;  %v1470_v55 = vpack.c.bf16 %v1249_v50, %v1246_v47  ;;  %v1280_v47 = vld [vmem:[%s1640_s22 + $0x378] sm:$0x3f] }
 0x122   : > { %v1419_v62 = vpack.c.bf16 %v474_v58, %v468_v56  ;;  %v478_v63 = vmul.f32 0.6931472, %v1534_v59  ;;  %v1438_v56 = vpack.c.bf16 %v1247_v52, %v1244_v51  ;;  %v1440_v58 = vpack.c.bf16 %v1254_v54, %v1251_v53  ;;  %v1255_v59 = vld [vmem:[%s1640_s22 + $0x2b0] sm:$0xff] }
 0x123   : > { %v1536_v2 = vpop.eup %1535  ;;  %v1417_v3 = vpack.c.bf16 %v476_v61, %v470_v60  ;;  %v1250_v60 = vld [vmem:[%s1640_s22 + $0x288] sm:$0xff]  ;;  %v1253_v61 = vld [vmem:[%s1640_s22 + $0x2a0] sm:$0xff] }
 0x124   : > { %v1538_v4 = vpop.eup %1537  ;;  %v1422_v5 = vpack.c.bf16 %v478_v63, %v472_v57  ;;  %v480_v17 = vmul.f32 0.6931472, %v1536_v2  ;;  %v1252_v57 = vld [vmem:[%s1640_s22 + $0x298] sm:$0xff] }
 0x125   : > { %v1540_v6 = vpop.eup %1539  ;;  %v482_v7 = vmul.f32 0.6931472, %v1538_v4  ;;  %1418 = vmatprep.subr.bf16.mxu0 %v1417_v3  ;;  %v1260_v63 = vld [vmem:[%s1640_s22 + $0x2d8] sm:$0xff]  ;;  %v1473_v2 = vpack.c.bf16 %v1255_v59, %v1252_v57  ;;  %v1442_v3 = vpack.c.bf16 %v1253_v61, %v1250_v60  ;;  %v1258_v4 = vld [vmem:[%s1640_s22 + $0x2c8] sm:$0xff] }
 0x126   : > { %v484_v11 = vmul.f32 0.6931472, %v1540_v6  ;;  %1423 = vmatpush3.bf16.msra.mxu1 %v1422_v5  ;;  %1420 = vmatpush1.bf16.msra.mxu0 %v1419_v62  ;;  %v1257_v62 = vld [vmem:[%s1640_s22 + $0x2c0] sm:$0xff] }
 0x127   : > { %1217 = vmatprep.subr.msk.mxu0 %vm495_vm3, %v482_v7  ;;  %1328 = vmatprep.subr.mxu1 %v1584_v23  ;;  %v1444_v5 = vpack.c.bf16 %v1260_v63, %v1257_v62  ;;  %v1261_v6 = vld [vmem:[%s1640_s22 + $0x2e0] sm:$0xff]  ;;  %v1256_v7 = vld [vmem:[%s1640_s22 + $0x2b8] sm:$0xff] }
 0x128   : > { %v1476_v10 = vpack.c.bf16 %v1261_v6, %v1258_v4 }
 0x12a   : > { %1329 = vmatpush3.msk.msra.mxu1 %vm495_vm3, %v484_v11  ;;  %1218 = vmatpush1.msk.msra.mxu0 %vm495_vm3, %v480_v17  ;;  %v1446_v11 = vpack.c.bf16 %v1259_v8, %v1256_v7  ;;  %v1269_v17 = vld [vmem:[%s1640_s22 + $0x320] sm:$0xff] }
 0x12b   : > { %1460 = vmatprep.subr.bf16.mxu1 %v1583_v1  ;;  %1219 = vmatmul.mubr.msk.f32.vlgmr.msra.gmra.mrb[6].mxu0 %vm485_vm4, %v1767_v18 }
 0x12c   : > { %1331 = vmatmul.mubr.msk.f32.vlgmr.msra.gmra.mrb[6].mxu1 %vm485_vm4, %v1767_v18  ;;  %1425 = vmatprep.subr.bf16.mxu0 %v1424_v19  ;;  %v1272_v19 = vld [vmem:[%s1640_s22 + $0x338] sm:$0xff] }
 0x12d   : > { %1462 = vmatpush1.bf16.msra.mxu1 %v1461_v20  ;;  %1427 = vmatpush1.bf16.msra.mxu0 %v1426_v21  ;;  %v1479_v20 = vpack.c.bf16 %v1267_v14, %v1264_v12  ;;  %v1450_v21 = vpack.c.bf16 %v1265_v16, %v1262_v15 }
 0x12e   : > { %1463 = vmatprep.subr.bf16.mxu1 %v1583_v1  ;;  %1429 = vmatprep.subr.bf16.mxu0 %v1428_v24  ;;  %v1452_v24 = vpack.c.bf16 %v1272_v19, %v1269_v17 }
 0x12f   : > { %575 = vmatprep.mubr.f32.mxu0 %v1584_v23  ;;  %1333 = vmatprep.mubr.msk.f32.mxu1 %vm1585_vm2, %v1584_v23 }
 0x130   : > { %1220 = vmatmul.mubr.msk.f32.gmra.mrb[8].mxu0 %vm485_vm4, %v1786_v38  ;;  %1334 = vmatmul.mubr.msk.f32.gmra.mrb[8].mxu1 %vm485_vm4, %v1786_v38 }
 0x131   : > { %1465 = vmatpush1.bf16.msra.mxu1 %v1464_v35  ;;  %1431 = vmatpush1.bf16.msra.mxu0 %v1430_v36  ;;  %v1482_v35 = vpack.c.bf16 %v1273_v30, %v1270_v22  ;;  %v1454_v36 = vpack.c.bf16 %v1271_v32, %v1268_v31 }
 0x132   : > { %1466 = vmatprep.subr.bf16.mxu1 %v1583_v1  ;;  %1433 = vmatprep.subr.bf16.mxu0 %v1432_v39  ;;  %v1456_v39 = vpack.c.bf16 %v1278_v34, %v1275_v33 }
 0x133   : > { %581 = vmatprep.mubr.f32.mxu0 %v1584_v23  ;;  %1336 = vmatprep.mubr.msk.f32.mxu1 %vm1585_vm2, %v1584_v23 }
 0x134   : > { %1221 = vmatmul.mubr.msk.f32.gmra.mrb[10].mxu0 %vm485_vm4, %v1805_v48  ;;  %1337 = vmatmul.mubr.msk.f32.gmra.mrb[10].mxu1 %vm485_vm4, %v1805_v48 }
 0x135   : > { %1468 = vmatpush1.bf16.msra.mxu1 %v1467_v45  ;;  %1435 = vmatpush1.bf16.msra.mxu0 %v1434_v46  ;;  %v1281_v45 = vld [vmem:[%s1640_s22 + $0x380] sm:$0x3f]  ;;  %v1282_v46 = vld [vmem:[%s1640_s22 + $0x388] sm:$0x3f] }
 0x136   : > { %1469 = vmatprep.subr.bf16.mxu1 %v1583_v1  ;;  %1437 = vmatprep.subr.bf16.mxu0 %v1436_v49 }
 0x137   : > { %1289 = vmatprep.mubr.msk.f32.mxu1 %vm284_vm0, %v1627_v0  ;;  %1285 = vmatprep.mubr.msk.f32.mxu0 %vm284_vm0, %v1627_v0  ;;  %v1266_v0 = vld [vmem:[%s1640_s22 + $0x308] sm:$0xff] }
 0x138   : > { %v1448_v13 = vpack.c.bf16 %v1266_v0, %v1263_v9 }
 0x139   : > { %1471 = vmatpush1.bf16.msra.mxu1 %v1470_v55  ;;  %1439 = vmatpush1.bf16.msra.mxu0 %v1438_v56 }
 0x13a   : > { %1472 = vmatprep.subr.bf16.mxu1 %v1583_v1  ;;  %1441 = vmatprep.subr.bf16.mxu0 %v1440_v58 }
 0x13d   : > { %1474 = vmatpush1.bf16.msra.mxu1 %v1473_v2  ;;  %1443 = vmatpush1.bf16.msra.mxu0 %v1442_v3 }
 0x13e   : > { %1475 = vmatprep.subr.bf16.mxu1 %v1583_v1  ;;  %1445 = vmatprep.subr.bf16.mxu0 %v1444_v5 }
 0x141   : > { %1477 = vmatpush1.bf16.msra.mxu1 %v1476_v10  ;;  %1447 = vmatpush1.bf16.msra.mxu0 %v1446_v11 }
 0x142   : > { %1478 = vmatprep.subr.bf16.mxu1 %v1583_v1  ;;  %1449 = vmatprep.subr.bf16.mxu0 %v1448_v13 }
 0x145   : > { %1480 = vmatpush1.bf16.msra.mxu1 %v1479_v20  ;;  %1451 = vmatpush1.bf16.msra.mxu0 %v1450_v21 }
 0x146   : > { %1481 = vmatprep.subr.bf16.mxu1 %v1583_v1  ;;  %1453 = vmatprep.subr.bf16.mxu0 %v1452_v24 }
 0x149   : > { %1483 = vmatpush1.bf16.msra.mxu1 %v1482_v35  ;;  %1455 = vmatpush1.bf16.msra.mxu0 %v1454_v36 }
 0x14a   : > { %1484 = vmatprep.subr.bf16.mxu1 %v1583_v1  ;;  %1457 = vmatprep.subr.bf16.mxu0 %v1456_v39 }
 0x14d   : > { %1486 = vmatpush1.bf16.msra.mxu1 %v1485_v43  ;;  %1459 = vmatpush1.bf16.msra.mxu0 %v1458_v44 }
 0x14e   : > { %865 = vmatprep.subr.mxu1 %v1584_v23  ;;  %1283 = vmatprep.subr.msk.mxu0 %vm294_vm1, %v1281_v45 }
 0x151   : > { %1288 = vmatpush1.msk.msra.mxu1 %vm294_vm1, %v1282_v46  ;;  %1284 = vmatpush1.msk.msra.mxu0 %vm294_vm1, %v1280_v47 }
 0x152   : > { %894 = vmatmul.mubr.f32.vlgmr.msra.gmra.mrb[12].mxu1 %v1712_v25  ;;  %811 = vmatmul.mubr.f32.vlgmr.msra.gmra.mrb[12].mxu0 %v1712_v25 }
 0x153   : > { %1290 = vmatprep.mubr.msk.f32.mxu1 %vm284_vm0, %v1717_v26  ;;  %1286 = vmatprep.mubr.msk.f32.mxu0 %vm284_vm0, %v1717_v26 }
 0x154   : > { %1491 = vmatprep.subr.bf16.mxu1 %v1583_v1 }
 0x156   : > { %899 = vmatmul.mubr.f32.gmra.mrb[14].mxu1 %v1728_v27  ;;  %817 = vmatmul.mubr.f32.gmra.mrb[14].mxu0 %v1728_v27 }
 0x157   : > { %1287 = vmatprep.mubr.msk.f32.mxu0 %vm284_vm0, %v1735_v28  ;;  %1291 = vmatprep.mubr.msk.f32.mxu1 %vm284_vm0, %v1735_v28 }
 0x15a   : > { %823 = vmatmul.mubr.f32.gmra.mrb[16].mxu0 %v1745_v29  ;;  %904 = vmatmul.mubr.f32.gmra.mrb[16].mxu1 %v1745_v29 }
 0x15b   : > { %1000 = vmatprep.mubr.f32.mxu0 %v1584_v23  ;;  %1345 = vmatprep.mubr.msk.f32.mxu1 %vm1585_vm2, %v1584_v23 }
 0x1fe   : > { %v571_v1 = vpop.f32.mrb[6].mxu0 }
 0x1ff   : > { %668 = vst [vmem:[%s1887_s19] sm:$0xff] %v571_v1  ;;  %v573_v25 = vpop.f32.mrb[7].mxu0  ;;  %v654_v26 = vpop.f32.mrb[6].mxu1 }
 0x200   : > { %669 = vst [vmem:[%s1887_s19 + $0x8] sm:$0xff] %v573_v25  ;;  %671 = vst.msk [vmem:[%s1887_s19 + $0x10] sm:$0xff] %vm670_vm5, %v654_v26  ;;  %v1332_v27 = vpop.f32.mrb[7].mxu1 }
 0x203   : > { %v577_v28 = vpop.f32.mrb[8].mxu0  ;;  %v659_v29 = vpop.f32.mrb[8].mxu1 }
 0x204   : > { %672 = vst [vmem:[%s1887_s19 + $0x18] sm:$0xff] %v577_v28  ;;  %v579_v49 = vpop.f32.mrb[9].mxu0  ;;  %674 = vst.msk [vmem:[%s1887_s19 + $0x28] sm:$0xff] %vm670_vm5, %v659_v29  ;;  %v1335_v50 = vpop.f32.mrb[9].mxu1 }
 0x205   : > { %673 = vst [vmem:[%s1887_s19 + $0x20] sm:$0xff] %v579_v49 }
 0x207   : > { %v583_v51 = vpop.f32.mrb[10].mxu0  ;;  %v664_v52 = vpop.f32.mrb[10].mxu1 }
 0x208   : > { %675 = vst [vmem:[%s1887_s19 + $0x30] sm:$0xf] %v583_v51  ;;  %v585_v53 = vpop.f32.mrb[11].mxu0  ;;  %678 = vst.msk [vmem:[%s1887_s19 + $0x40] sm:$0xf] %vm677_vm6, %v664_v52  ;;  %v1338_v54 = vpop.f32.mrb[11].mxu1 }
 0x209   : > { %676 = vst [vmem:[%s1887_s19 + $0x38] sm:$0xf] %v585_v53 }
 0x225   : > { %v812_v55 = vpop.f32.mrb[12].mxu0  ;;  %v895_v56 = vpop.f32.mrb[12].mxu1 }
 0x226   : > { %v813_v57 = vadd.f32 1e-12, %v812_v55  ;;  %v814_v58 = vpop.f32.mrb[13].mxu0  ;;  %v896_v59 = vadd.f32 1e-12, %v895_v56  ;;  %v897_v60 = vpop.f32.mrb[13].mxu1 }
 0x227   : > { %v815_v61 = vadd.f32 1e-12, %v814_v58 }
 0x228   : > { %1541 = vlog2.f32 %v813_v57 }
 0x229   : > { %v900_v62 = vpop.f32.mrb[14].mxu1  ;;  %v818_v63 = vpop.f32.mrb[14].mxu0  ;;  %1543 = vlog2.f32 %v896_v59 }
 0x22a   : > { %v901_v2 = vadd.f32 1e-12, %v900_v62  ;;  %v819_v3 = vadd.f32 1e-12, %v818_v63  ;;  %v820_v4 = vpop.f32.mrb[15].mxu0  ;;  %v902_v5 = vpop.f32.mrb[15].mxu1  ;;  %1545 = vlog2.f32 %v815_v61 }
 0x22b   : > { %v821_v6 = vadd.f32 1e-12, %v820_v4 }
 0x22c   : > { %1547 = vlog2.f32 %v901_v2 }
 0x22d   : > { %1549 = vlog2.f32 %v819_v3  ;;  %v824_v7 = vpop.f32.mrb[16].mxu0  ;;  %v905_v8 = vpop.f32.mrb[16].mxu1 }
 0x22e   : > { %1551 = vlog2.f32 %v821_v6  ;;  %v826_v9 = vpop.f32.mrb[17].mxu0  ;;  %v906_v0 = vadd.f32 1e-12, %v905_v8  ;;  %v907_v10 = vpop.f32.mrb[17].mxu1  ;;  %v825_v11 = vadd.f32 1e-12, %v824_v7 }
 0x22f   : > { %v827_v12 = vadd.f32 1e-12, %v826_v9 }
 0x231   : > { %1553 = vlog2.f32 %v827_v12 }
 0x232   : > { %1555 = vlog2.f32 %v906_v0  ;;  %v1542_v13 = vpop.eup %1541 }
 0x233   : > { %1557 = vlog2.f32 %v825_v11  ;;  %v1544_v14 = vpop.eup %1543  ;;  %v910_v22 = vmul.f32 0.6931472, %v1542_v13 }
 0x234   : > { %v1546_v15 = vpop.eup %1545  ;;  %v914_v16 = vmul.f32 0.6931472, %v1544_v14 }
 0x235   : > { %v912_v30 = vmul.f32 0.6931472, %v1546_v15 }
 0x236   : > { %v1548_v17 = vpop.eup %1547 }
 0x237   : > { %v1550_v19 = vpop.eup %1549  ;;  %v920_v20 = vmul.f32 0.6931472, %v1548_v17 }
 0x238   : > { %v1552_v21 = vpop.eup %1551  ;;  %v916_v24 = vmul.f32 0.6931472, %v1550_v19 }
 0x239   : > { %v1492_v31 = vpack.c.bf16 %v920_v20, %v914_v16  ;;  %v918_v32 = vmul.f32 0.6931472, %v1552_v21 }
 0x23a   : > { %v1489_v33 = vpack.c.bf16 %v916_v24, %v910_v22 }
 0x23b   : > { %v1554_v34 = vpop.eup %1553  ;;  %1493 = vmatpush3.bf16.msra.mxu1 %v1492_v31  ;;  %v1487_v35 = vpack.c.bf16 %v918_v32, %v912_v30 }
 0x23c   : > { %v1556_v36 = vpop.eup %1555  ;;  %v924_v37 = vmul.f32 0.6931472, %v1554_v34  ;;  %1343 = vmatprep.subr.mxu1 %v1584_v23 }
 0x23d   : > { %v1558_v39 = vpop.eup %1557  ;;  %v926_v40 = vmul.f32 0.6931472, %v1556_v36  ;;  %1488 = vmatprep.subr.bf16.mxu0 %v1487_v35 }
 0x23e   : > { %1490 = vmatpush1.bf16.msra.mxu0 %v1489_v33  ;;  %v922_v41 = vmul.f32 0.6931472, %v1558_v39 }
 0x23f   : > { %1292 = vmatprep.subr.msk.mxu0 %vm495_vm3, %v924_v37  ;;  %1344 = vmatpush3.msk.msra.mxu1 %vm495_vm3, %v926_v40 }
 0x240   : > { %1346 = vmatmul.mubr.msk.f32.vlgmr.msra.gmra.mrb[18].mxu1 %vm485_vm4, %v1767_v18 }
 0x241   : > { %1348 = vmatprep.mubr.msk.f32.mxu1 %vm1585_vm2, %v1584_v23 }
 0x242   : > { %1293 = vmatpush1.msk.msra.mxu0 %vm495_vm3, %v922_v41 }
 0x243   : > { %1294 = vmatmul.mubr.msk.f32.vlgmr.msra.gmra.mrb[18].mxu0 %vm485_vm4, %v1767_v18 }
 0x244   : > { %1006 = vmatprep.mubr.f32.mxu0 %v1584_v23  ;;  %1349 = vmatmul.mubr.msk.f32.gmra.mrb[20].mxu1 %vm485_vm4, %v1786_v38 }
 0x245   : > { %1351 = vmatprep.mubr.msk.f32.mxu1 %vm1585_vm2, %v1584_v23 }
 0x247   : > { %1295 = vmatmul.mubr.msk.f32.gmra.mrb[20].mxu0 %vm485_vm4, %v1786_v38 }
 0x248   : > { %1012 = vmatprep.mubr.f32.mxu0 %v1584_v23  ;;  %1352 = vmatmul.mubr.msk.f32.gmra.mrb[22].mxu1 %vm485_vm4, %v1805_v48 }
 0x24b   : > { %1296 = vmatmul.mubr.msk.f32.gmra.mrb[22].mxu0 %vm485_vm4, %v1805_v48 }
 0x313   : > { %v1085_v18 = vpop.f32.mrb[18].mxu1 }
 0x314   : > { %1303 = vst.msk [vmem:[%s1887_s19 + $0x58] sm:$0xff] %vm670_vm5, %v1085_v18  ;;  %v1347_v42 = vpop.f32.mrb[19].mxu1 }
 0x316   : > { %v1002_v43 = vpop.f32.mrb[18].mxu0 }
 0x317   : > { %1301 = vst [vmem:[%s1887_s19 + $0x48] sm:$0xff] %v1002_v43  ;;  %v1004_v44 = vpop.f32.mrb[19].mxu0  ;;  %v1090_v38 = vpop.f32.mrb[20].mxu1 }
 0x318   : > { %1302 = vst [vmem:[%s1887_s19 + $0x50] sm:$0xff] %v1004_v44  ;;  %1306 = vst.msk [vmem:[%s1887_s19 + $0x70] sm:$0xff] %vm670_vm5, %v1090_v38  ;;  %v1350_v23 = vpop.f32.mrb[21].mxu1 }
 0x31a   : > { %v1008_v45 = vpop.f32.mrb[20].mxu0 }
 0x31b   : > { %1304 = vst [vmem:[%s1887_s19 + $0x60] sm:$0xff] %v1008_v45  ;;  %v1010_v46 = vpop.f32.mrb[21].mxu0  ;;  %v1095_v47 = vpop.f32.mrb[22].mxu1 }
 0x31c   : > { %1305 = vst [vmem:[%s1887_s19 + $0x68] sm:$0xff] %v1010_v46  ;;  %1309 = vst.msk [vmem:[%s1887_s19 + $0x88] sm:$0xf] %vm677_vm6, %v1095_v47  ;;  %v1353_v48 = vpop.f32.mrb[23].mxu1 }
 0x31e   : > { %v1014_v1 = vpop.f32.mrb[22].mxu0 }
 0x31f   : > { %1307 = vst [vmem:[%s1887_s19 + $0x78] sm:$0xf] %v1014_v1  ;;  %v1016_v25 = vpop.f32.mrb[23].mxu0 }
 0x320   : > { %1308 = vst [vmem:[%s1887_s19 + $0x80] sm:$0xf] %v1016_v25 }
 0x321 PF: > { %s13_s14 = sadd.s32 1, %s1581_s14   ;;  %s1948_s12 = smov %s1577_s13 }
 0x322   : > { %p10_p5 = scmp.ge.s32.totalorder %s13_s14, 4   ;;  %s1949_s13 = smov %s1951_s15 }
 0x324   :  { %12 = sbr.rel (!%p10_p5) target bundleno = 2 (0x2), region = 64 }

</bundles_post_ra>
